<compile_context>
chip_gen: v6e
topology: v6e:2x2x1
jax: 0.10.0
libtpu: 0.0.40
codegen_flags: <defaults>
</compile_context>

<pallas_src>
import functools

import jax
import jax.numpy as jnp
from jax.experimental import pallas as pl
from jax.experimental.pallas import tpu as pltpu


def _round_up(x, m):
    return ((x + m - 1) // m) * m


def _cat_acc_kernel(logits_ref, labels_ref, part_ref, *, n_total, tn,
                    widen_outputs, widen_labels):
    """One row-tile: argmax both inputs along the class (lane) axis, compare,
    and emit the per-tile correct count broadcast into an (8,128) slab."""
    i = pl.program_id(0)

    o = logits_ref[...]            # (TN, C) native dtype
    l = labels_ref[...]            # (TN, C) native dtype
    if widen_outputs:              # only on chips without native bf16 VPU
        o = o.astype(jnp.float32)
    if widen_labels:
        l = l.astype(jnp.float32)
    TN, C = o.shape

    # (1, C) iota; the where() broadcasts it (no full-tile int32 temporary).
    ids = jax.lax.broadcasted_iota(jnp.int32, (1, C), 1)

    # argmax with first-occurrence tie-break (matches torch.argmax / jnp.argmax).
    # TODO(synk): rows containing NaN collapse to index C in both tensors and are
    # counted "correct" if both are NaN -- differs from torch.argmax NaN behaviour.
    o_max = jnp.max(o, axis=1, keepdims=True)
    pred = jnp.min(jnp.where(o == o_max, ids, C), axis=1, keepdims=True)   # (TN, 1)

    l_max = jnp.max(l, axis=1, keepdims=True)
    truth = jnp.min(jnp.where(l == l_max, ids, C), axis=1, keepdims=True)  # (TN, 1)

    ok = pred == truth                                                     # (TN, 1)

    # Mask rows past the true batch size (only when the grid overruns N).
    if n_total % tn != 0:
        row = jax.lax.broadcasted_iota(jnp.int32, (TN, 1), 0) + i * TN
        ok = jnp.logical_and(ok, row < n_total)

    partial = jnp.sum(ok.astype(jnp.float32))          # scalar correct-count (f32;
    part_ref[...] = jnp.broadcast_to(partial, part_ref.shape)  # exact to 2^24 rows)


def categorical_accuracy(outputs, labels, *, block_rows=None):
    """Pallas equivalent of CategoricalAccuracy.forward(outputs, labels).

    outputs, labels: (N, C) arrays (class axis last), any floating dtype.
    """
    assert outputs.shape == labels.shape and outputs.ndim == 2
    n, c = outputs.shape

    # --- generation-aware configuration -------------------------------------
    try:
        vmem_cap = int(pltpu.get_tpu_info().vmem_capacity_bytes)
    except Exception:
        vmem_cap = 64 << 20          # v7x per-TC VMEM: safe lower bound everywhere
    try:
        kind = jax.devices()[0].device_kind.lower()
    except Exception:
        kind = ""
    bf16_native = ("v6" in kind) or ("v7" in kind)   # bf16-capable VPU

    def _needs_widen(dt):
        dt = jnp.dtype(dt)
        if dt == jnp.float32:
            return False
        if dt == jnp.bfloat16 and bf16_native:
            return False
        return True                   # v5e (no bf16 VPU) and exotic dtypes

    widen_outputs = _needs_widen(outputs.dtype)
    widen_labels = _needs_widen(labels.dtype)

    o_bytes = jnp.dtype(outputs.dtype).itemsize
    l_bytes = jnp.dtype(labels.dtype).itemsize

    # --- VMEM accounting & tile sizing ---------------------------------------
    # A (tn, C) block occupies tn * round_up(C, 128) * itemsize in VMEM (lane
    # padding); each input is double-buffered by the pipeline; add an allowance
    # for the in-kernel f32/int32 temporaries (widened copies, where-results).
    c_pad = _round_up(c, 128)
    per_row = 2 * c_pad * (o_bytes + l_bytes) + 4 * c_pad * 4

    budget = max(int(0.70 * vmem_cap), 16 << 20)

    if block_rows is not None:
        tn = int(block_rows)
    else:
        tn = budget // per_row
        tn = max(8, (tn // 8) * 8)            # sublane-aligned row tiles
        # Keep >= 2 grid steps so the "parallel" axis feeds both v7x TensorCores.
        if tn >= n:
            tn = max(8, _round_up(pl.cdiv(n, 2), 8))

    num_tiles = pl.cdiv(n, tn)

    in_spec = pl.BlockSpec((tn, c), lambda i: (i, 0))
    out_spec = pl.BlockSpec((1, 8, 128), lambda i: (i, 0, 0))

    needed = tn * per_row + (8 << 20)                          # footprint + headroom
    vmem_limit = int(min(max(16 << 20, needed), int(0.85 * vmem_cap)))

    partials = pl.pallas_call(
        functools.partial(_cat_acc_kernel, n_total=n, tn=tn,
                          widen_outputs=widen_outputs, widen_labels=widen_labels),
        out_shape=jax.ShapeDtypeStruct((num_tiles, 8, 128), jnp.float32),
        grid=(num_tiles,),
        in_specs=[in_spec, in_spec],
        out_specs=out_spec,
        compiler_params=pltpu.CompilerParams(
            dimension_semantics=("parallel",),   # independent tiles -> both v7x TCs
            vmem_limit_bytes=vmem_limit,
        ),
    )(outputs, labels)

    # TODO(synk): for C < 128, lane-packing G=128//C rows per vreg row (free
    # wrapper reshape + segmented argmax via rolls) would give dense DMA rows
    # and ~4x smaller VMEM tiles; left out to keep the kernel simple/robust.

    # Tiny epilogue in plain XLA: one partial per tile, a single divide by N.
    return jnp.sum(partials[:, 0, 0]) / jnp.float32(n)


if __name__ == "__main__":
    key = jax.random.PRNGKey(0)
    k1, k2, k3, k4 = jax.random.split(key, 4)

    # Case 1: small bf16 logits + bf16 one-hot labels, default tile sizing
    # (native-dtype compare on v6e/v7x, widened on older chips).
    N, C = 64, 32
    outputs = jax.random.normal(k1, (N, C), dtype=jnp.float32).astype(jnp.bfloat16)
    label_ids = jax.random.randint(k2, (N,), 0, C)
    labels = jax.nn.one_hot(label_ids, C, dtype=jnp.bfloat16)

    acc = jax.block_until_ready(categorical_accuracy(outputs, labels))
    ref = jnp.mean(
        (jnp.argmax(outputs, axis=1) == jnp.argmax(labels, axis=1)).astype(jnp.float32)
    )
    assert jnp.allclose(acc, ref), (acc, ref)

    # Case 2: multi-tile grid with a ragged last block (masking path), f32,
    # "soft" labels (not one-hot) to exercise the generic label argmax.
    N2, C2 = 52, 32
    outputs2 = jax.random.normal(k3, (N2, C2), dtype=jnp.float32)
    labels2 = jax.random.normal(k4, (N2, C2), dtype=jnp.float32)

    acc2 = jax.block_until_ready(categorical_accuracy(outputs2, labels2, block_rows=16))
    ref2 = jnp.mean(
        (jnp.argmax(outputs2, axis=1) == jnp.argmax(labels2, axis=1)).astype(jnp.float32)
    )
    assert jnp.allclose(acc2, ref2), (acc2, ref2)

    print("KERNEL_OK")
</pallas_src>

<mosaic_0001>
module attributes {stable_mosaic.version = 11 : i64} {
  func.func @_cat_acc_kernel(%arg0: i32, %arg1: memref<32x32xbf16, #tpu.memory_space<vmem>>, %arg2: memref<32x32xbf16, #tpu.memory_space<vmem>>, %arg3: memref<1x8x128xf32, #tpu.memory_space<vmem>>) attributes {dimension_semantics = [#tpu.dimension_semantics<parallel>], iteration_bounds = array<i64: 2>, scalar_prefetch = 0 : i64, scratch_operands = 0 : i64, tpu.core_type = #tpu.core_type<tc>, window_params = [{transform_indices = @transform_0, window_bounds = array<i64: 32, 32>}, {transform_indices = @transform_1, window_bounds = array<i64: 32, 32>}, {transform_indices = @transform_2, window_bounds = array<i64: 1, 8, 128>}]} {
    %c0 = arith.constant 0 : index
    %c0_0 = arith.constant 0 : index
    %0 = vector.load %arg1[%c0, %c0_0] : memref<32x32xbf16, #tpu.memory_space<vmem>>, vector<32x32xbf16>
    %c0_1 = arith.constant 0 : index
    %c0_2 = arith.constant 0 : index
    %1 = vector.load %arg2[%c0_1, %c0_2] : memref<32x32xbf16, #tpu.memory_space<vmem>>, vector<32x32xbf16>
    %2 = arith.extf %0 : vector<32x32xbf16> to vector<32x32xf32>
    %3 = arith.extf %1 : vector<32x32xbf16> to vector<32x32xf32>
    %4 = tpu.iota {dimensions = array<i32: 1>} : vector<1x32xi32>
    %cst = arith.constant dense<0xFF800000> : vector<32xf32>
    %5 = vector.multi_reduction <maximumf>, %2, %cst [1] : vector<32x32xf32> to vector<32xf32>
    %6 = vector.shape_cast %5 : vector<32xf32> to vector<32x1xf32>
    %7 = vector.broadcast %6 : vector<32x1xf32> to vector<32x32xf32>
    %8 = arith.cmpf oeq, %2, %7 : vector<32x32xf32>
    %c32_i32 = arith.constant 32 : i32
    %9 = vector.shape_cast %4 : vector<1x32xi32> to vector<1x32xi32>
    %10 = vector.broadcast %9 : vector<1x32xi32> to vector<32x32xi32>
    %11 = vector.broadcast %c32_i32 : i32 to vector<32x32xi32>
    %12 = arith.select %8, %10, %11 : vector<32x32xi1>, vector<32x32xi32>
    %cst_3 = arith.constant dense<2147483647> : vector<32xi32>
    %13 = vector.multi_reduction <minsi>, %12, %cst_3 [1] : vector<32x32xi32> to vector<32xi32>
    %14 = vector.shape_cast %13 : vector<32xi32> to vector<32x1xi32>
    %cst_4 = arith.constant dense<0xFF800000> : vector<32xf32>
    %15 = vector.multi_reduction <maximumf>, %3, %cst_4 [1] : vector<32x32xf32> to vector<32xf32>
    %16 = vector.shape_cast %15 : vector<32xf32> to vector<32x1xf32>
    %17 = vector.broadcast %16 : vector<32x1xf32> to vector<32x32xf32>
    %18 = arith.cmpf oeq, %3, %17 : vector<32x32xf32>
    %c32_i32_5 = arith.constant 32 : i32
    %19 = vector.shape_cast %4 : vector<1x32xi32> to vector<1x32xi32>
    %20 = vector.broadcast %19 : vector<1x32xi32> to vector<32x32xi32>
    %21 = vector.broadcast %c32_i32_5 : i32 to vector<32x32xi32>
    %22 = arith.select %18, %20, %21 : vector<32x32xi1>, vector<32x32xi32>
    %cst_6 = arith.constant dense<2147483647> : vector<32xi32>
    %23 = vector.multi_reduction <minsi>, %22, %cst_6 [1] : vector<32x32xi32> to vector<32xi32>
    %24 = vector.shape_cast %23 : vector<32xi32> to vector<32x1xi32>
    %25 = arith.cmpi eq, %14, %24 : vector<32x1xi32>
    %26 = arith.extui %25 : vector<32x1xi1> to vector<32x1xi32>
    %27 = arith.sitofp %26 : vector<32x1xi32> to vector<32x1xf32>
    %28 = vector.shape_cast %27 : vector<32x1xf32> to vector<1x32x1xf32>
    %cst_7 = arith.constant dense<0.000000e+00> : vector<1xf32>
    %29 = vector.multi_reduction <add>, %28, %cst_7 [1, 2] : vector<1x32x1xf32> to vector<1xf32>
    %30 = vector.shape_cast %29 : vector<1xf32> to vector<1x1x1xf32>
    %31 = vector.extract %30[0, 0, 0] : f32 from vector<1x1x1xf32>
    %32 = vector.broadcast %31 : f32 to vector<1x8x128xf32>
    %c0_8 = arith.constant 0 : index
    %c0_9 = arith.constant 0 : index
    %c0_10 = arith.constant 0 : index
    %33 = vector.load %arg3[%c0_8, %c0_9, %c0_10] : memref<1x8x128xf32, #tpu.memory_space<vmem>>, vector<1x8x128xf32>
    tpu.vector_store %arg3[%c0_8, %c0_9, %c0_10], %32 {strides = array<i32>} : memref<1x8x128xf32, #tpu.memory_space<vmem>>, vector<1x8x128xf32>,
    return
  }
  func.func @transform_0(%arg0: i32) -> (i32, i32) {
    %c0_i32 = arith.constant 0 : i32
    %c0_i32_0 = arith.constant 0 : i32
    return %arg0, %c0_i32 : i32, i32
  }
  func.func @transform_1(%arg0: i32) -> (i32, i32) {
    %c0_i32 = arith.constant 0 : i32
    %c0_i32_0 = arith.constant 0 : i32
    return %arg0, %c0_i32 : i32, i32
  }
  func.func @transform_2(%arg0: i32) -> (i32, i32, i32) {
    %c0_i32 = arith.constant 0 : i32
    %c0_i32_0 = arith.constant 0 : i32
    %c0_i32_1 = arith.constant 0 : i32
    return %arg0, %c0_i32, %c0_i32_0 : i32, i32, i32
  }
}

</mosaic_0001>

<bundles_post_ra>
// kernel: tpu_custom_call.1
= control target key start
LH: loop header
LB: loop body
LE: loop exit
PB: predicated region body
PF: predicated region fallthrough
CT: control target
= control target key end

     0   :  { %7 = vsyncpa [#allocation3], 0  ;;  %s740_s0 = inlined_call_operand.vmem [shape: bf16[64,32], index: 0, kind: input, shape index: {}]   ;;  %s741_s1 = inlined_call_operand.vmem [shape: bf16[64,32], index: 1, kind: input, shape index: {}]   ;;  %s742_s2 = inlined_call_operand.hbm [shape: f32[2,8,128], index: 2, kind: output, shape index: {}]  }
   0x1   :  { %9 = vsyncpa [#allocation3 + $0x1], 0  ;;  %s617_s9 = smov 0   ;;  %s619_s10 = smov 0  }
   0x2   :  { %s621_s11 = smov 0   ;;  %s623_s12 = smov 0  }
   0x3 LB: > { %s638_s13 = sadd.s32 4294967295, %s598_s12   ;;  %s461_s14 = sadd.s32 4294967294, %s598_s12   ;;  %s598_s12 = sphi %s623_s12, %s748_s12   ;;  %s594_s11 = sphi %s621_s11, %s747_s11   ;;  %s590_s10 = sphi %s619_s10, %s746_s10   ;;  %s586_s9 = sphi %s617_s9, %s745_s9  }
   0x4   : > { %s642_s15 = sadd.s32 1, %s598_s12   ;;  %s74_s16 = sadd.s32 1, %s594_s11 }
   0x5   : > { %s71_s17 = ssub.s32 %s598_s12, %s642_s15  ;;  %p84_p0 = scmp.ne.s32.totalorder %s594_s11, %s590_s10 }
   0x6   : > { %p72_p1 = scmp.eq.s32.totalorder %s71_s17, 0  ;;  %p85_p2 = scmp.eq.s32.totalorder %s638_s13, 1 }
   0x7   : > { %p90_p3 = scmp.ne.s32.totalorder %s590_s10, %s586_s9  ;;  %p91_p4 = scmp.eq.s32.totalorder %s461_s14, 1 }
   0x8   : > { %s653_s18 = scalar_select %p72_p1, %s594_s11, %s74_s16  }
   0x9   : > { %p655_p5 = por %p85_p2, %p84_p0  ;;  %p659_p6 = por %p91_p4, %p90_p3 }
   0xa   : > { %p464_p7 = scmp.ge.s32.totalorder %s598_s12, 1  ;;  %p127_p8 = scmp.lt.s32.totalorder %s598_s12, 3 }
   0xc   : > { %p128_p9 = pnand %p464_p7, %p127_p8 }
   0xd   : > { %s466_s21 = sshll.u32 (!%p128_p9), %s638_s13, 2  ;;  %s151_s29 = sand.u32 (!%p128_p9), 1, %s590_s10  }
   0xe   : > { %131 = sbr.rel (%p128_p9) target bundleno = 688 (0x2b0), region = 28  ;;  %p155_p10 = scmp.lt.s32.totalorder (!%p128_p9), %s466_s21, 7 }
   0xf   : > { %s465_s30 = sshll.u32 (!%p128_p9), %s151_s29, 3  ;;  %s475_s5 = sshll.u32 (!%p128_p9), %s638_s13, 7 }
  0x10   : > { %s153_s3 = scalar_lea.vmem (!%p128_p9), [#allocation2], %s465_s30  ;;  %s388_s14 = scalar_lea.hbm (!%p128_p9), %s742_s2, %s475_s5 }
  0x11   : > { %s390_s4 = sshll.u32 (!%p128_p9), %s153_s3, 4  ;;  %s377_s16 = scalar_lea.sflag (!%p128_p9), [#allocation3], %s151_s29  ;;  %s702_s4 = int_to_ptr.vmem [resolvable:$true] %s390_s4 }
  0x12   : > { %s538_s17 = scalar_lea.vmem (!%p128_p9), %s702_s4, 128 }
  0x13   : > { %s750_s21 = smov (!%p155_p10, %s466_s21), 7  ;;  %vm184_vm0 = vcmask 261120   ;;  %v182_v20 = vlaneseq  ;;  %p539_p11 = scmp.ne.s32.totalorder %s702_s4, %s538_s17 }
  0x14   : > { %s467_s22 = sshll.u32 %s750_s21, 2  ;;  %s601_s21 = smov [#allocation2]  }
  0x15   : > { %s158_s25 = scalar_lea.vmem %s740_s0, %s467_s22  ;;  %s164_s28 = scalar_lea.vmem %s741_s1, %s467_s22  ;;  %v183_v21 = vand.u32 127, %v182_v20 }
  0x16   : > { %v479_v0 = vld [vmem:[%s158_s25] sm:$0xff]   ;;  %v672_v6 = vld [vmem:[%s158_s25 + $0x8] sm:$0xff]   ;;  %p540_p12 = pnand %p539_p11, %p655_p5  ;;  %s542_s13 = sshll.u32 %s601_s21, 4  ;;  %s543_s13 = int_to_ptr.vmem [resolvable:$false] %s542_s13 }
  0x17   : > { %v487_v1 = vld [vmem:[%s164_s28] sm:$0xff]   ;;  %v480_v2 = vunpack.c.l.bf16 %v479_v0  ;;  %v481_v4 = vunpack.c.h.bf16 %v479_v0  ;;  %v674_v7 = vld [vmem:[%s164_s28 + $0x8] sm:$0xff]   ;;  %v484_v12 = vunpack.c.l.bf16 %v672_v6  ;;  %v485_v16 = vunpack.c.h.bf16 %v672_v6  ;;  %s544_s22 = scalar_lea.vmem %s543_s13, 256  ;;  %p545_p0 = scmp.lt.s32.totalorder %s702_s4, %s543_s13 }
  0x18   : > { %v488_v3 = vunpack.c.l.bf16 %v487_v1  ;;  %v489_v5 = vunpack.c.h.bf16 %v487_v1  ;;  %v492_v13 = vunpack.c.l.bf16 %v674_v7  ;;  %v493_v17 = vunpack.c.h.bf16 %v674_v7  ;;  %p541_p13 = pneg %p540_p12  ;;  %p546_p1 = scmp.lt.s32.totalorder %s544_s22, %s538_s17 }
  0x19   : > { %v185_v8 = vsel %vm184_vm0, %v480_v2, -inf  ;;  %v188_v10 = vsel %vm184_vm0, %v481_v4, -inf  ;;  %v191_v14 = vsel %vm184_vm0, %v484_v12, -inf  ;;  %v194_v18 = vsel %vm184_vm0, %v485_v16, -inf }
  0x1a   : > { %v265_v9 = vsel %vm184_vm0, %v488_v3, -inf  ;;  %186 = vmax.xlane.f32.xlu0 %v185_v8  ;;  %v268_v11 = vsel %vm184_vm0, %v489_v5, -inf  ;;  %v271_v15 = vsel %vm184_vm0, %v492_v13, -inf  ;;  %v274_v19 = vsel %vm184_vm0, %v493_v17, -inf  ;;  %p547_p2 = por %p546_p1, %p545_p0 }
  0x1b   : > { %266 = vmax.xlane.f32.xlu1 %v265_v9 }
  0x1c   : > { %p548_p3 = pnand %p547_p2, %p541_p13 }
  0x1e   : > { %189 = vmax.xlane.f32.xlu0 %v188_v10 }
  0x1f   : > { %269 = vmax.xlane.f32.xlu1 %v268_v11 }
  0x22   : > { %192 = vmax.xlane.f32.xlu0 %v191_v14 }
  0x23   : > { %272 = vmax.xlane.f32.xlu1 %v271_v15 }
  0x26   : > { %195 = vmax.xlane.f32.xlu0 %v194_v18 }
  0x27   : > { %275 = vmax.xlane.f32.xlu1 %v274_v19 }
  0xa3   : > { %v187_v22 = vpop.xlane.xlu0 %186 }
  0xa4   : > { %v267_v23 = vpop.xlane.xlu1 %266  ;;  %vm197_vm1 = vcmp.eq.f32.partialorder %v480_v2, %v187_v22 }
  0xa5   : > { %vm277_vm2 = vcmp.eq.f32.partialorder %v488_v3, %v267_v23  ;;  %v201_v24 = vsel %vm197_vm1, %v183_v21, 32 }
  0xa6   : > { %v281_v25 = vsel %vm277_vm2, %v183_v21, 32  ;;  %v205_v26 = vsel %vm184_vm0, %v201_v24, 2147483647  ;;  %vm357_vm2 = vcmask 7168  }
  0xa7   : > { %v285_v27 = vsel %vm184_vm0, %v281_v25, 2147483647  ;;  %v190_v28 = vpop.xlane.xlu0 %189  ;;  %v207_v30 = vshra.s32 %v205_v26, 16  ;;  %v206_v62 = vand.u32 65535, %v205_v26 }
  0xa8   : > { %v270_v29 = vpop.xlane.xlu1 %269  ;;  %v287_v31 = vshra.s32 %v285_v27, 16  ;;  %vm198_vm3 = vcmp.eq.f32.partialorder %v481_v4, %v190_v28  ;;  %v286_v2 = vand.u32 65535, %v285_v27 }
  0xa9   : > { %vm278_vm4 = vcmp.eq.f32.partialorder %v489_v5, %v270_v29  ;;  %v202_v32 = vsel %vm198_vm3, %v183_v21, 32  ;;  %v209_v34 = vcvt.s32.f32 %v207_v30  ;;  %v208_v0 = vcvt.s32.f32 %v206_v62 }
  0xaa   : > { %v282_v33 = vsel %vm278_vm4, %v183_v21, 32  ;;  %v220_v35 = vsel %vm184_vm0, %v202_v32, 2147483647  ;;  %v289_v39 = vcvt.s32.f32 %v287_v31  ;;  %v288_v7 = vcvt.s32.f32 %v286_v2 }
  0xab   : > { %v300_v36 = vsel %vm184_vm0, %v282_v33, 2147483647  ;;  %210 = vmin.xlane.f32.xlu0 %v209_v34  ;;  %v193_v37 = vpop.xlane.xlu0 %192  ;;  %v222_v40 = vshra.s32 %v220_v35, 16  ;;  %v221_v1 = vand.u32 65535, %v220_v35 }
  0xac   : > { %v273_v38 = vpop.xlane.xlu1 %272  ;;  %v302_v41 = vshra.s32 %v300_v36, 16  ;;  %vm199_vm5 = vcmp.eq.f32.partialorder %v484_v12, %v193_v37  ;;  %v301_v8 = vand.u32 65535, %v300_v36 }
  0xad   : > { %vm279_vm6 = vcmp.eq.f32.partialorder %v492_v13, %v273_v38  ;;  %v203_v42 = vsel %vm199_vm5, %v183_v21, 32  ;;  %v224_v44 = vcvt.s32.f32 %v222_v40  ;;  %v223_v6 = vcvt.s32.f32 %v221_v1 }
  0xae   : > { %v283_v43 = vsel %vm279_vm6, %v183_v21, 32  ;;  %v235_v45 = vsel %vm184_vm0, %v203_v42, 2147483647  ;;  %v304_v49 = vcvt.s32.f32 %v302_v41  ;;  %v303_v14 = vcvt.s32.f32 %v301_v8 }
  0xaf   : > { %v315_v46 = vsel %vm184_vm0, %v283_v43, 2147483647  ;;  %290 = vmin.xlane.f32.xlu0 %v289_v39  ;;  %225 = vmin.xlane.f32.xlu1 %v224_v44  ;;  %v196_v47 = vpop.xlane.xlu0 %195  ;;  %v237_v50 = vshra.s32 %v235_v45, 16  ;;  %v236_v9 = vand.u32 65535, %v235_v45 }
  0xb0   : > { %v276_v48 = vpop.xlane.xlu1 %275  ;;  %v317_v51 = vshra.s32 %v315_v46, 16  ;;  %vm200_vm7 = vcmp.eq.f32.partialorder %v485_v16, %v196_v47  ;;  %v316_v16 = vand.u32 65535, %v315_v46 }
  0xb1   : > { %vm280_vm8 = vcmp.eq.f32.partialorder %v493_v17, %v276_v48  ;;  %v204_v52 = vsel %vm200_vm7, %v183_v21, 32  ;;  %v239_v54 = vcvt.s32.f32 %v237_v50  ;;  %v238_v15 = vcvt.s32.f32 %v236_v9 }
  0xb2   : > { %v284_v53 = vsel %vm280_vm8, %v183_v21, 32  ;;  %v250_v55 = vsel %vm184_vm0, %v204_v52, 2147483647  ;;  %v319_v57 = vcvt.s32.f32 %v317_v51  ;;  %v318_v22 = vcvt.s32.f32 %v316_v16 }
  0xb3   : > { %v330_v56 = vsel %vm184_vm0, %v284_v53, 2147483647  ;;  %305 = vmin.xlane.f32.xlu1 %v304_v49  ;;  %240 = vmin.xlane.f32.xlu0 %v239_v54  ;;  %v252_v58 = vshra.s32 %v250_v55, 16  ;;  %v251_v17 = vand.u32 65535, %v250_v55 }
  0xb4   : > { %v332_v59 = vshra.s32 %v330_v56, 16  ;;  %v331_v24 = vand.u32 65535, %v330_v56  ;;  %v600_v56 = vmov 0.0  }
  0xb5   : > { %v254_v60 = vcvt.s32.f32 %v252_v58  ;;  %v253_v23 = vcvt.s32.f32 %v251_v17 }
  0xb6   : > { %v334_v61 = vcvt.s32.f32 %v332_v59  ;;  %v333_v28 = vcvt.s32.f32 %v331_v24 }
  0xb7   : > { %320 = vmin.xlane.f32.xlu1 %v319_v57  ;;  %255 = vmin.xlane.f32.xlu0 %v254_v60 }
  0xbb   : > { %335 = vmin.xlane.f32.xlu1 %v334_v61 }
 0x134   : > { %v211_v63 = vpop.xlane.xlu0 %210 }
 0x135   : > { %vm212_vm9 = vcmp.eq.f32.partialorder %v209_v34, %v211_v63  ;;  %v217_v31 = vcvt.f32.s32 %v211_v63 }
 0x136   : > { %v213_v3 = vsel %vm212_vm9, %v208_v0, inf }
 0x137   : > { %214 = vmin.xlane.f32.xlu0 %v213_v3  ;;  %v218_v38 = vshll.u32 %v217_v31, 16 }
 0x138   : > { %v226_v4 = vpop.xlane.xlu1 %225  ;;  %v291_v5 = vpop.xlane.xlu0 %290 }
 0x139   : > { %vm227_vm10 = vcmp.eq.f32.partialorder %v224_v44, %v226_v4  ;;  %vm292_vm11 = vcmp.eq.f32.partialorder %v289_v39, %v291_v5  ;;  %v297_v32 = vcvt.f32.s32 %v291_v5  ;;  %v232_v34 = vcvt.f32.s32 %v226_v4 }
 0x13a   : > { %v228_v10 = vsel %vm227_vm10, %v223_v6, inf  ;;  %v293_v11 = vsel %vm292_vm11, %v288_v7, inf }
 0x13b   : > { %229 = vmin.xlane.f32.xlu1 %v228_v10  ;;  %294 = vmin.xlane.f32.xlu0 %v293_v11  ;;  %v298_v39 = vshll.u32 %v297_v32, 16  ;;  %v233_v44 = vshll.u32 %v232_v34, 16 }
 0x13c   : > { %v306_v12 = vpop.xlane.xlu1 %305  ;;  %v241_v13 = vpop.xlane.xlu0 %240 }
 0x13d   : > { %vm307_vm12 = vcmp.eq.f32.partialorder %v304_v49, %v306_v12  ;;  %vm242_vm13 = vcmp.eq.f32.partialorder %v239_v54, %v241_v13  ;;  %v312_v35 = vcvt.f32.s32 %v306_v12  ;;  %v247_v46 = vcvt.f32.s32 %v241_v13 }
 0x13e   : > { %v308_v18 = vsel %vm307_vm12, %v303_v14, inf  ;;  %v243_v19 = vsel %vm242_vm13, %v238_v15, inf }
 0x13f   : > { %309 = vmin.xlane.f32.xlu1 %v308_v18  ;;  %244 = vmin.xlane.f32.xlu0 %v243_v19  ;;  %v313_v45 = vshll.u32 %v312_v35, 16  ;;  %v248_v54 = vshll.u32 %v247_v46, 16 }
 0x140   : > { %v321_v20 = vpop.xlane.xlu1 %320  ;;  %v256_v21 = vpop.xlane.xlu0 %255 }
 0x141   : > { %vm322_vm14 = vcmp.eq.f32.partialorder %v319_v57, %v321_v20  ;;  %vm257_vm15 = vcmp.eq.f32.partialorder %v254_v60, %v256_v21  ;;  %v327_v49 = vcvt.f32.s32 %v321_v20  ;;  %v262_v55 = vcvt.f32.s32 %v256_v21 }
 0x142   : > { %v323_v25 = vsel %vm322_vm14, %v318_v22, inf  ;;  %v258_v26 = vsel %vm257_vm15, %v253_v23, inf }
 0x143   : > { %324 = vmin.xlane.f32.xlu1 %v323_v25  ;;  %259 = vmin.xlane.f32.xlu0 %v258_v26  ;;  %v328_v60 = vshll.u32 %v327_v49, 16  ;;  %v263_v7 = vshll.u32 %v262_v55, 16 }
 0x144   : > { %v336_v27 = vpop.xlane.xlu1 %335 }
 0x145   : > { %vm337_vm0 = vcmp.eq.f32.partialorder %v334_v61, %v336_v27  ;;  %v342_v61 = vcvt.f32.s32 %v336_v27 }
 0x146   : > { %v338_v29 = vsel %vm337_vm0, %v333_v28, inf }
 0x147   : > { %339 = vmin.xlane.f32.xlu1 %v338_v29  ;;  %v343_v8 = vshll.u32 %v342_v61, 16 }
 0x1c0   : > { %v215_v30 = vpop.xlane.xlu0 %214 }
 0x1c1   : > { %v216_v33 = vcvt.f32.s32 %v215_v30 }
 0x1c3   : > { %v219_v41 = vadd.s32 %v218_v38, %v216_v33 }
 0x1c4   : > { %v230_v36 = vpop.xlane.xlu1 %229  ;;  %v295_v37 = vpop.xlane.xlu0 %294 }
 0x1c5   : > { %v296_v40 = vcvt.f32.s32 %v295_v37  ;;  %v231_v42 = vcvt.f32.s32 %v230_v36 }
 0x1c7   : > { %v299_v43 = vadd.s32 %v298_v39, %v296_v40  ;;  %v234_v52 = vadd.s32 %v233_v44, %v231_v42 }
 0x1c8   : > { %v310_v47 = vpop.xlane.xlu1 %309  ;;  %v245_v48 = vpop.xlane.xlu0 %244 }
 0x1c9   : > { %vm345_vm1 = vcmp.eq.s32.totalorder %v219_v41, %v299_v43  ;;  %v311_v50 = vcvt.f32.s32 %v310_v47  ;;  %v246_v51 = vcvt.f32.s32 %v245_v48 }
 0x1ca   : > { %v470_v57 = vsel %vm345_vm1, 1.0, %v600_v56 }
 0x1cb   : > { %v314_v53 = vadd.s32 %v313_v45, %v311_v50  ;;  %v249_v0 = vadd.s32 %v248_v54, %v246_v51  ;;  %v358_v3 = vsel %vm357_vm2, %v470_v57, 0.0 }
 0x1cc   : > { %v325_v58 = vpop.xlane.xlu1 %324  ;;  %v260_v59 = vpop.xlane.xlu0 %259 }
 0x1cd   : > { %vm346_vm3 = vcmp.eq.s32.totalorder %v234_v52, %v314_v53  ;;  %v326_v62 = vcvt.f32.s32 %v325_v58  ;;  %v261_v2 = vcvt.f32.s32 %v260_v59 }
 0x1ce   : > { %v471_v63 = vsel %vm346_vm3, 1.0, %v600_v56 }
 0x1cf   : > { %v329_v1 = vadd.s32 %v328_v60, %v326_v62  ;;  %v359_v4 = vsel %vm357_vm2, %v471_v63, 0.0  ;;  %v264_v11 = vadd.s32 %v263_v7, %v261_v2 }
 0x1d0   : > { %v340_v5 = vpop.xlane.xlu1 %339  ;;  %v360_v6 = vadd.f32 %v359_v4, %v358_v3 }
 0x1d1   : > { %vm347_vm4 = vcmp.eq.s32.totalorder %v249_v0, %v329_v1  ;;  %v341_v9 = vcvt.f32.s32 %v340_v5 }
 0x1d2   : > { %v472_v10 = vsel %vm347_vm4, 1.0, %v600_v56 }
 0x1d3   : > { %v344_v12 = vadd.s32 %v343_v8, %v341_v9  ;;  %v361_v13 = vsel %vm357_vm2, %v472_v10, 0.0 }
 0x1d4   : > { %v362_v14 = vadd.f32 %v361_v13, %v360_v6 }
 0x1d5   : > { %vm348_vm5 = vcmp.eq.s32.totalorder %v264_v11, %v344_v12 }
 0x1d6   : > { %v473_v15 = vsel %vm348_vm5, 1.0, %v600_v56 }
 0x1d7   : > { %v363_v16 = vsel %vm357_vm2, %v473_v15, 0.0 }
 0x1d8   : > { %v364_v17 = vadd.f32 %v363_v16, %v362_v14 }
 0x1da   : > { %365 = vadd.xlane.f32.xlu0 %v364_v17 }
 0x263   : > { %v366_v18 = vpop.xlane.xlu0 %365 }
 0x264   : > { %v367_v19 = vrot.slane %v366_v18, 4 }
 0x266   : > { %v368_v20 = vadd.f32 %v367_v19, %v366_v18 }
 0x268   : > { %v369_v21 = vrot.slane %v368_v20, 2 }
 0x26a   : > { %v370_v22 = vadd.f32 %v369_v21, %v368_v20 }
 0x26c   : > { %v371_v23 = vrot.slane %v370_v22, 1 }
 0x26e   : > { %v372_v24 = vadd.f32 %v371_v23, %v370_v22 }
 0x270   : > { %496 = vpush %v372_v24 }
 0x2a1   : > { %s497_s6 = spop %496 }
 0x2a2   : > { %v374_v25 = vstv %s497_s6 }
 0x2a3   : > { %375 = vst [vmem:[%s153_s3] sm:$0xff] %v374_v25 }
 0x2a4   : > { %551 = shalt.err (!%p548_p3)
}
 0x2a5   : > { %s552_s23 = scalar_lea.hbm %s388_s14, 128  ;;  %s556_s26 = scalar_lea.hbm %s742_s2, 256 }
 0x2a6   : > { %p553_p4 = scmp.ne.s32.totalorder %s388_s14, %s552_s23  ;;  %p557_p9 = scmp.lt.s32.totalorder %s388_s14, %s742_s2 }
 0x2a7   : > { %p558_p10 = scmp.lt.s32.totalorder %s556_s26, %s552_s23 }
 0x2a8   : > { %p554_p7 = pnand %p553_p4, %p655_p5 }
 0x2a9   : > { %p559_p11 = por %p558_p10, %p557_p9 }
 0x2aa   : > { %p555_p8 = pneg %p554_p7 }
 0x2ac   : > { %p560_p12 = pnand %p559_p11, %p555_p8 }
 0x2ae   : > { %563 = shalt.err (!%p560_p12)
}
 0x2af   : > { %498 = dma.vmem_to_hbm [thread:$0]  (%p655_p5), %s702_s4, 128, %s388_s14, %s377_s16  }
 0x2b0 PF: > { %p504_p13 = scmp.ge.s32.totalorder %s598_s12, 2  ;;  %s402_s29 = sand.u32 1, %s586_s9  }
 0x2b1   : > { %s403_s30 = scalar_lea.sflag [#allocation3], %s402_s29 }
 0x2b2   : > { %p501_p0 = pnand %p504_p13, %p659_p6 }
 0x2b4   : > { %p502_p1 = pneg %p501_p0 }
 0x2b6   : > { %581 = dma.done.wait (%p502_p1), %s403_s30, 128  }
 0x2b7   : > { %583 = vsyncadd (%p502_p1), %s403_s30, 4294967168  ;;  %p12_p2 = scmp.ge.s32.totalorder %s642_s15, 4   ;;  %s745_s9 = smov %s590_s10 }
 0x2b8   : > { %s746_s10 = smov %s594_s11  ;;  %s747_s11 = smov %s653_s18 }
 0x2b9   : > { %s748_s12 = smov %s642_s15  ;;  %14 = sbr.rel (!%p12_p2) target bundleno = 3 (0x3), region = 66 }
 0x2be   :  { %408 = vsyncpa [#allocation3], 1 }
 0x2bf   :  { %410 = vsyncpa [#allocation3 + $0x1], 1 }

</bundles_post_ra>
